<compile_context>
chip_gen: v7x
topology: tpu7x:2x2x1
jax: 0.10.0
libtpu: 0.0.40
codegen_flags: <defaults>
</compile_context>

<pallas_src>
import jax
import jax.numpy as jnp
from jax.experimental import pallas as pl
from jax.experimental.pallas import tpu as pltpu


_TARGET_BLOCK_BYTES = 4 << 20    # ~4 MiB input blocks: HBM-bound sweet spot on all gens
_MIN_BLOCK_BYTES = 1 << 20       # don't let the ">=8 L-steps" rule shrink blocks below ~1 MiB
_VMEM_BUDGET_BYTES = 12 << 20    # dbl-buffered in+out must fit v5e's 16 MiB scoped default


def _round_up(x, m):
    return (x + m - 1) // m * m


def _round_down_mult(x, m):
    return max(m, x // m * m)


def _choose_tiles(B, C, L, itemsize, target_block_bytes, min_block_bytes):
    """Pick (TB, TL) for input blocks (TB, C, TL) and output blocks (TB, TL)."""
    # ---- lane (L) tile: a multiple of 128, or the full L extent ----
    if L <= 128:
        TL = L
    else:
        per_lane = max(1, B * C * itemsize)          # input bytes per lane column
        tl_by_size = _round_down_mult(target_block_bytes // per_lane, 128)
        # Prefer >= ~8 L grid steps (feeds both v7x TensorCores) but never at the
        # cost of dropping below ~min_block_bytes per block.
        tl_floor = _round_up(pl.cdiv(min_block_bytes, per_lane), 128)
        tl_steps = _round_up(pl.cdiv(L, 8), 128)
        tl = min(tl_by_size, max(tl_floor, tl_steps))
        TL = L if tl >= L else tl                    # full-extent block when it covers L

    # ---- batch (B) tile: fold the whole batch unless scoped VMEM would overflow ----
    def vmem_bytes(tb, tl):
        # double-buffered input + double-buffered f32 output
        return 2 * tb * tl * (C * itemsize + 4)

    TB = B
    if vmem_bytes(TB, TL) > _VMEM_BUDGET_BYTES:
        # shrink the lane tile first (only legal while it stays a multiple of 128) ...
        while TL > 128 and TL % 128 == 0 and vmem_bytes(TB, TL) > _VMEM_BUDGET_BYTES:
            TL -= 128
        # ... then tile the batch in multiples of 8 (ragged last B block is fine).
        if vmem_bytes(TB, TL) > _VMEM_BUDGET_BYTES and B > 8:
            TB = 8
            while TB * 2 < B and vmem_bytes(TB * 2, TL) <= _VMEM_BUDGET_BYTES:
                TB *= 2
        # (Pathological C*itemsize per row > ~1.5 KiB with tiny B is not tiled
        #  further; the C reduction must stay whole within a block.)
    return TB, TL


def _channel_mean_kernel(x_ref, o_ref):
    # x_ref: (TB, C, TL) input block; o_ref: (TB, TL) output block.
    x = x_ref[...].astype(jnp.float32)                       # in-kernel cast (free under DMA)
    s = jnp.sum(x, axis=1)                                   # (TB, TL)
    cnt = jnp.sum((x != 0.0).astype(jnp.float32), axis=1)    # (TB, TL), exact 0/1 sums
    o_ref[...] = s / jnp.maximum(cnt, 1.0)                   # cnt[cnt == 0] = 1, exact divide


def get_channel_mean(x, keepdim=True, *,
                     target_block_bytes=_TARGET_BLOCK_BYTES,
                     min_block_bytes=_MIN_BLOCK_BYTES):
    """x: (B, C, L) -> (B, 1, L) if keepdim else (B, L); float32 output."""
    B, C, L = x.shape
    itemsize = x.dtype.itemsize

    TB, TL = _choose_tiles(B, C, L, itemsize, target_block_bytes, min_block_bytes)
    grid = (pl.cdiv(B, TB), pl.cdiv(L, TL))

    # Optional triple-buffering of the input: only when blocks are small (many
    # short strided rows -> exposed DMA) and there are enough grid steps to hide it.
    in_spec_kwargs = {}
    if grid[0] * grid[1] >= 4 and TB * C * TL * itemsize <= (2 << 20):
        in_spec_kwargs["pipeline_mode"] = pl.Buffered(3)

    cost = pl.CostEstimate(
        flops=3 * B * C * L + B * L,
        transcendentals=0,
        bytes_accessed=B * C * L * itemsize + B * L * 4,
    )

    out = pl.pallas_call(
        _channel_mean_kernel,
        out_shape=jax.ShapeDtypeStruct((B, L), jnp.float32),
        grid_spec=pltpu.PrefetchScalarGridSpec(
            num_scalar_prefetch=0,
            grid=grid,
            in_specs=[pl.BlockSpec((TB, C, TL), lambda b, l: (b, 0, l),
                                   **in_spec_kwargs)],
            out_specs=pl.BlockSpec((TB, TL), lambda b, l: (b, l)),
        ),
        compiler_params=pltpu.CompilerParams(
            dimension_semantics=("parallel", "parallel")),
        cost_estimate=cost,
    )(x)

    if keepdim:
        return out[:, None, :]        # (B, 1, L) == mean.unsqueeze(-1).permute(0, 2, 1)
    return out                        # (B, L)


def _reference(x, keepdim=True):
    # Pure-JAX reference mirroring the PyTorch forward.
    xt = jnp.transpose(x, (0, 2, 1)).astype(jnp.float32)     # (B, L, C)
    s = jnp.sum(xt, axis=-1)
    cnt = jnp.sum((xt != 0).astype(jnp.float32), axis=-1)
    cnt = jnp.where(cnt == 0, 1.0, cnt)
    mean = s / cnt
    if keepdim:
        return jnp.transpose(mean[..., None], (0, 2, 1))
    return mean


def _make_input(key, B, C, L, dtype=jnp.float32):
    k1, k2 = jax.random.split(key)
    x = jax.random.normal(k1, (B, C, L), dtype=jnp.float32)
    mask = jax.random.bernoulli(k2, p=0.6, shape=(B, C, L))
    x = x * mask.astype(jnp.float32)
    x = x.at[:, :, 0].set(0.0)        # a fully-zero column -> cnt clamped to 1
    return x.astype(dtype)


if __name__ == "__main__":
    key = jax.random.PRNGKey(0)
    k1, k2, k3 = jax.random.split(key, 3)

    # Case 1: tiny shape consistent with the module (full-extent blocks, single step).
    x1 = _make_input(k1, 2, 4, 16)
    out1 = jax.block_until_ready(get_channel_mean(x1, keepdim=True))
    ref1 = _reference(x1, keepdim=True)
    assert out1.shape == (2, 1, 16), out1.shape
    assert jnp.allclose(out1, ref1, atol=1e-6, rtol=1e-6), "mismatch (case 1)"

    out1_nk = jax.block_until_ready(get_channel_mean(x1, keepdim=False))
    assert out1_nk.shape == (2, 16), out1_nk.shape
    assert jnp.allclose(out1_nk, _reference(x1, keepdim=False),
                        atol=1e-6, rtol=1e-6), "mismatch (keepdim=False)"

    # Case 2: non-128-multiple L, B not a multiple of 8 -> single full-extent
    # block, no padding copy anywhere.
    x2 = _make_input(k2, 10, 9, 200)
    out2 = jax.block_until_ready(get_channel_mean(x2, keepdim=True))
    assert out2.shape == (10, 1, 200), out2.shape
    assert jnp.allclose(out2, _reference(x2), atol=1e-5, rtol=1e-5), "mismatch (case 2)"

    # Case 3: bf16 input + forced-small tiles -> multi-step grid over L with a
    # ragged last block and the Buffered(3) input pipeline (exercises the
    # no-pad edge handling and the in-kernel dtype cast).
    x3 = _make_input(k3, 3, 5, 2000, dtype=jnp.bfloat16)
    out3 = jax.block_until_ready(
        get_channel_mean(x3, keepdim=True,
                         target_block_bytes=16 << 10, min_block_bytes=8 << 10))
    assert out3.shape == (3, 1, 2000), out3.shape
    assert jnp.allclose(out3, _reference(x3), atol=1e-5, rtol=1e-5), "mismatch (case 3)"

    print("KERNEL_OK")
</pallas_src>

<mosaic_0001>
module attributes {stable_mosaic.version = 11 : i64} {
  func.func @_channel_mean_kernel(%arg0: i32, %arg1: i32, %arg2: memref<2x4x16xf32, #tpu.memory_space<vmem>>, %arg3: memref<2x16xf32, #tpu.memory_space<vmem>>) attributes {dimension_semantics = [#tpu.dimension_semantics<parallel>, #tpu.dimension_semantics<parallel>], iteration_bounds = array<i64: 1, 1>, scalar_prefetch = 0 : i64, scratch_operands = 0 : i64, tpu.core_type = #tpu.core_type<tc>, window_params = [{transform_indices = @transform_0, window_bounds = array<i64: 2, 4, 16>}, {transform_indices = @transform_1, window_bounds = array<i64: 2, 16>}]} {
    %c0 = arith.constant 0 : index
    %c0_0 = arith.constant 0 : index
    %c0_1 = arith.constant 0 : index
    %0 = vector.load %arg2[%c0, %c0_0, %c0_1] : memref<2x4x16xf32, #tpu.memory_space<vmem>>, vector<2x4x16xf32>
    %cst = arith.constant dense<0.000000e+00> : vector<2x16xf32>
    %1 = vector.multi_reduction <add>, %0, %cst [1] : vector<2x4x16xf32> to vector<2x16xf32>
    %cst_2 = arith.constant 0.000000e+00 : f32
    %2 = vector.broadcast %cst_2 : f32 to vector<2x4x16xf32>
    %3 = arith.cmpf one, %0, %2 : vector<2x4x16xf32>
    %4 = arith.extui %3 : vector<2x4x16xi1> to vector<2x4x16xi32>
    %5 = arith.sitofp %4 : vector<2x4x16xi32> to vector<2x4x16xf32>
    %cst_3 = arith.constant dense<0.000000e+00> : vector<2x16xf32>
    %6 = vector.multi_reduction <add>, %5, %cst_3 [1] : vector<2x4x16xf32> to vector<2x16xf32>
    %cst_4 = arith.constant 1.000000e+00 : f32
    %7 = vector.broadcast %cst_4 : f32 to vector<2x16xf32>
    %8 = arith.maximumf %6, %7 : vector<2x16xf32>
    %9 = arith.divf %1, %8 : vector<2x16xf32>
    %c0_5 = arith.constant 0 : index
    %c0_6 = arith.constant 0 : index
    %10 = vector.load %arg3[%c0_5, %c0_6] : memref<2x16xf32, #tpu.memory_space<vmem>>, vector<2x16xf32>
    tpu.vector_store %arg3[%c0_5, %c0_6], %9 {strides = array<i32>} : memref<2x16xf32, #tpu.memory_space<vmem>>, vector<2x16xf32>,
    return
  }
  func.func @transform_0(%arg0: i32, %arg1: i32) -> (i32, i32, i32) {
    %c0_i32 = arith.constant 0 : i32
    %c0_i32_0 = arith.constant 0 : i32
    return %arg0, %c0_i32, %arg1 : i32, i32, i32
  }
  func.func @transform_1(%arg0: i32, %arg1: i32) -> (i32, i32) {
    %c0_i32 = arith.constant 0 : i32
    return %arg0, %arg1 : i32, i32
  }
}

</mosaic_0001>

<bundles_post_ra>
// kernel: tpu_custom_call.1
= control target key start
LH: loop header
LB: loop body
LE: loop exit
PB: predicated region body
PF: predicated region fallthrough
CT: control target
= control target key end

     0   :  { %6 = vsyncpa [#allocation3], 0  ;;  %s186_s0 = inlined_call_operand.hbm [shape: f32[2,4,16], index: 0, kind: input, shape index: {}]   ;;  %s187_s1 = inlined_call_operand.hbm [shape: f32[2,16], index: 1, kind: output, shape index: {}]  }
   0x1   :  { %7 = vsyncpa [#allocation4], 0  ;;  %s147_s6 = smov [#allocation2]   ;;  %s99_s10 = scalar_lea.hbm %s186_s0, 128 }
   0x2   :  { %s13_s7 = sshll.u32 %s147_s6, 4  ;;  %p100_p0 = scmp.ne.s32.totalorder %s186_s0, %s99_s10  ;;  %s14_s7 = int_to_ptr.vmem [resolvable:$true] %s13_s7 }
   0x3   :  { %p103_p1 = scmp.lt.u32.totalorder %s99_s10, %s186_s0 }
   0x5   :  { %p105_p2 = pnand %p103_p1, %p100_p0 }
   0x7   :  { %108 = shalt.err (!%p105_p2)
}
   0x8   :  { %s109_s15 = scalar_lea.vmem %s14_s7, 128  ;;  %p114_p4 = scmp.lt.s32.totalorder %s14_s7, %s14_s7 }
   0x9   :  { %p110_p3 = scmp.ne.s32.totalorder %s14_s7, %s109_s15  ;;  %p115_p5 = scmp.lt.s32.totalorder %s109_s15, %s109_s15 }
   0xb   :  { %p116_p6 = por %p115_p5, %p114_p4 }
   0xd   :  { %p117_p7 = pnand %p116_p6, %p110_p3 }
   0xf   :  { %120 = shalt.err (!%p117_p7)
}
  0x10   :  { %s148_s16 = smov 64   ;;  %s149_s17 = smov 4  }
  0x11   :  { %19 = dma.hbm_to_vmem [thread:$0]  %s186_s0, 128, %s14_s7, [#allocation3], %s148_s16, %s148_s16, %s149_s17  }
  0x12   :  { %143 = dma.done.wait [#allocation3], 128  }
  0x13   :  { %144 = vsyncadd [#allocation3], 4294967168  ;;  %v23_v0 = vld [vmem:[#allocation2] sm:$0xf]  ;;  %v24_v1 = vld [vmem:[#allocation2 + $0x4] sm:$0xf] }
  0x14   :  { %vm25_vm0 = vcmask 125952   ;;  %vm40_vm1 = vcmp.ne.f32.partialorder %v23_v0, 0.0  ;;  %vm41_vm2 = vcmp.ne.f32.partialorder %v24_v1, 0.0  ;;  %v150_v3 = vmov 0.0   ;;  %s151_s0 = smov [#allocation5]  }
  0x15   :  { %v26_v2 = vsel %vm25_vm0, %v23_v0, 0.0  ;;  %v88_v4 = vsel %vm40_vm1, 1.0, %v150_v3  ;;  %v89_v5 = vsel %vm41_vm2, 1.0, %v150_v3  ;;  %v33_v6 = vsel %vm25_vm0, %v24_v1, 0.0  ;;  %s79_s20 = sshll.u32 %s151_s0, 4  ;;  %s80_s20 = int_to_ptr.vmem [resolvable:$true] %s79_s20 }
  0x16   :  { %v46_v7 = vsel %vm25_vm0, %v88_v4, 0.0  ;;  %v53_v8 = vsel %vm25_vm0, %v89_v5, 0.0  ;;  %v27_v11 = vrot.slane %v26_v2, 4  ;;  %v34_v12 = vrot.slane %v33_v6, 4  ;;  %s121_s21 = scalar_lea.vmem %s80_s20, 32  ;;  %p126_p9 = scmp.lt.s32.totalorder %s80_s20, %s80_s20 }
  0x17   :  { %v47_v9 = vrot.slane %v46_v7, 4  ;;  %v54_v10 = vrot.slane %v53_v8, 4  ;;  %vm68_vm3 = vcmask 1041409   ;;  %vm71_vm4 = vcmask 123904   ;;  %p122_p8 = scmp.ne.s32.totalorder %s80_s20, %s121_s21  ;;  %p127_p10 = scmp.lt.s32.totalorder %s121_s21, %s121_s21 }
  0x18   :  { %v28_v17 = vadd.f32 %v27_v11, %v26_v2  ;;  %v35_v18 = vadd.f32 %v34_v12, %v33_v6 }
  0x19   :  { %v48_v13 = vadd.f32 %v47_v9, %v46_v7  ;;  %v55_v14 = vadd.f32 %v54_v10, %v53_v8  ;;  %p128_p11 = por %p127_p10, %p126_p9 }
  0x1a   :  { %v29_v23 = vrot.slane %v28_v17, 2  ;;  %v36_v24 = vrot.slane %v35_v18, 2 }
  0x1b   :  { %v49_v15 = vrot.slane %v48_v13, 2  ;;  %v56_v16 = vrot.slane %v55_v14, 2  ;;  %p129_p12 = pnand %p128_p11, %p122_p8 }
  0x1c   :  { %v30_v29 = vadd.f32 %v29_v23, %v28_v17  ;;  %v37_v30 = vadd.f32 %v36_v24, %v35_v18 }
  0x1d   :  { %v50_v19 = vadd.f32 %v49_v15, %v48_v13  ;;  %v57_v20 = vadd.f32 %v56_v16, %v55_v14 }
  0x1e   :  { %v31_v31 = vrot.slane %v30_v29, 1  ;;  %v38_v32 = vrot.slane %v37_v30, 1 }
  0x1f   :  { %v51_v21 = vrot.slane %v50_v19, 1  ;;  %v58_v22 = vrot.slane %v57_v20, 1 }
  0x20   :  { %v32_v33 = vadd.f32 %v31_v31, %v30_v29  ;;  %v39_v34 = vadd.f32 %v38_v32, %v37_v30 }
  0x21   :  { %v52_v25 = vadd.f32 %v51_v21, %v50_v19  ;;  %v59_v26 = vadd.f32 %v58_v22, %v57_v20 }
  0x23   :  { %v60_v27 = vmax.f32 %v52_v25, 1.0  ;;  %v61_v28 = vmax.f32 %v59_v26, 1.0 }
  0x25   :  { %95 = vrcp.f32 %v60_v27 }
  0x26   :  { %97 = vrcp.f32 %v61_v28 }
  0x2f   :  { %v96_v35 = vpop.eup %95 }
  0x30   :  { %v98_v36 = vpop.eup %97  ;;  %v63_v37 = vmul.f32 %v96_v35, %v32_v33 }
  0x31   :  { %v65_v38 = vmul.f32 %v98_v36, %v39_v34 }
  0x33   :  { %v69_v39 = vsel %vm68_vm3, %v65_v38, %v63_v37 }
  0x34   :  { %72 = vst.msk [vmem:[#allocation5] sm:$0x3] %vm71_vm4, %v69_v39 }
  0x35   :  { %132 = shalt.err (!%p129_p12)
}
  0x36   :  { %s133_s24 = scalar_lea.hbm %s187_s1, 32 }
  0x37   :  { %p134_p13 = scmp.ne.s32.totalorder %s187_s1, %s133_s24  ;;  %p137_p0 = scmp.lt.u32.totalorder %s133_s24, %s187_s1 }
  0x39   :  { %p139_p1 = pnand %p137_p0, %p134_p13 }
  0x3b   :  { %142 = shalt.err (!%p139_p1)
}
  0x3c   :  { %82 = dma.vmem_to_hbm [thread:$0]  %s80_s20, 32, %s187_s1, [#allocation4]  }
  0x3d   :  { %145 = dma.done.wait [#allocation4], 32  }
  0x3e   :  { %146 = vsyncadd [#allocation4], 4294967264 }
  0x3f   :  { %86 = vsyncpa [#allocation3], 1 }
  0x40   :  { %87 = vsyncpa [#allocation4], 1 }

</bundles_post_ra>
